<compile_context>
chip_gen: v6e
topology: v6e:2x2x1
jax: 0.10.0
libtpu: 0.0.40
codegen_flags: <defaults>
</compile_context>

<pallas_src>
import functools

import jax
import jax.numpy as jnp
from jax.experimental import pallas as pl
from jax.experimental.pallas import tpu as pltpu

_INV_SQRT2 = 0.7071067811865476
_SQRT_2_OVER_PI = 0.7978845608028654


def _mlp_kernel(x_ref, w1_ref, b1_ref, w2_ref, b2_ref, o_ref, acc_ref, *, use_tanh_gelu):
    # x_ref:  (tm, d_in)        w1_ref: (d_in, th)     b1_ref: (1, th)
    # w2_ref: (th, d_out)       b2_ref: (1, d_out)
    # o_ref:  (tm, d_out)       acc_ref: (tm, d_out) f32 scratch
    k = pl.program_id(1)

    @pl.when(k == 0)
    def _init():
        # Fold fc2 bias into the accumulator init (added exactly once, no zero-fill).
        acc_ref[...] = jnp.broadcast_to(b2_ref[...].astype(jnp.float32), acc_ref.shape)

    # fc1 slab: native-dtype MXU inputs, f32 accumulation via preferred_element_type.
    h = jnp.dot(x_ref[...], w1_ref[...], preferred_element_type=jnp.float32)
    h = h + b1_ref[...].astype(jnp.float32)

    if use_tanh_gelu:
        # tanh-approx GELU: tanh runs on the EUP (own VLIW slot) -> frees the VALU.
        h = 0.5 * h * (1.0 + jnp.tanh(_SQRT_2_OVER_PI * (h + 0.044715 * h * h * h)))
    else:
        # Exact erf-based GELU -- matches F.gelu / nn.GELU(approximate='none').
        h = 0.5 * h * (1.0 + jax.lax.erf(h * _INV_SQRT2))

    # fc2 partial product over this hidden slice, accumulated in f32.
    acc_ref[...] += jnp.dot(h.astype(w2_ref.dtype), w2_ref[...],
                            preferred_element_type=jnp.float32)

    @pl.when(k == pl.num_programs(1) - 1)
    def _finalize():
        o_ref[...] = acc_ref[...].astype(o_ref.dtype)


def _round_up(x, m):
    return ((x + m - 1) // m) * m


def _cdiv(a, b):
    return -(-a // b)


def _sublane_multiple(dtype):
    # 8 for f32, 16 for bf16, 32 for int8/fp8 (sub-32-bit dtypes pack along sublanes).
    return max(8, 32 // jnp.dtype(dtype).itemsize)


def _vmem_budget_bytes():
    """Generation-aware VMEM budget (capacity minus headroom, fallback = v7x 64 MiB)."""
    try:
        cap = int(pltpu.get_tpu_info().vmem_capacity_bytes)
    except Exception:
        cap = 64 * 1024 * 1024  # conservative: v7x per-TC VMEM
    budget = max(cap - 8 * 1024 * 1024, 32 * 1024 * 1024)
    return min(budget, cap), cap


def _footprint_bytes(tm, th, d_in, d_out, x_it, w_it, o_it, b_it):
    """Per-step VMEM working set (double-buffered streams, f32 acc, f32 fc1 slab)."""
    buf = 0
    buf += 2 * tm * d_in * x_it            # x row tile (double-buffered)
    buf += 2 * d_in * th * w_it            # W1 hidden slab
    buf += 2 * th * b_it                   # b1 slab
    buf += 2 * th * d_out * w_it           # W2 hidden slab
    buf += 2 * d_out * b_it                # b2
    buf += 2 * tm * d_out * o_it           # output tile
    buf += tm * d_out * 4                  # f32 accumulator scratch
    buf += tm * th * 4 + tm * th * w_it    # f32 fc1 slab + its down-cast for dot2
    return buf


def _choose_tiles(m, d_in, d_hidden, d_out, x_it, w_it, o_it, b_it,
                  sublane, tm_target, max_th, budget):
    """Pick (tm, th, n_rows, n_hidden, m_pad, h_pad); tm first (intensity knob)."""
    m_sub = _round_up(max(m, 1), sublane)

    # Row-tile candidates: descending from tm_target by halving, sublane-aligned.
    tm_cands = []
    t = max(_round_up(min(tm_target, m_sub), sublane), sublane)
    while t > sublane:
        tm_cands.append(t)
        t = max(_round_up(t // 2, sublane), sublane)
    tm_cands.append(sublane)
    tm_cands = list(dict.fromkeys(tm_cands))

    # Hidden-tile candidates: full (padded) hidden dim first (resident weights, DMA
    # dedup across row tiles), then descending multiples of 256, then 128.
    d_hid_full = _round_up(d_hidden, 128)
    th_cands = [d_hid_full]
    t = min(_round_up(max_th, 256), d_hid_full)
    t = (t // 256) * 256
    while t >= 256:
        if t < d_hid_full:
            th_cands.append(t)
        t -= 256
    if d_hid_full > 128:
        th_cands.append(128)

    tm_fit, th_fit = sublane, 128
    found = False
    for tm_c in tm_cands:
        for th_c in th_cands:
            if _footprint_bytes(tm_c, th_c, d_in, d_out, x_it, w_it, o_it, b_it) <= budget:
                tm_fit, th_fit = tm_c, th_c
                found = True
                break
        if found:
            break
    # TODO(synk): if even (sublane, 128) does not fit (d_out extremely large), add a
    # third "parallel" grid axis tiling d_out instead of relying on the compiler.

    # Balance row tiles: keeps padding waste < sublane per tile instead of a full tile.
    n_rows = _cdiv(m_sub, tm_fit)
    tm_eff = _round_up(_cdiv(m_sub, n_rows), sublane)

    # Balance hidden tiles (prefer 256-aligned; never exceed the fitted th).
    n_hidden = _cdiv(d_hidden, th_fit)
    th_bal = _round_up(_cdiv(d_hidden, n_hidden), 128)
    th_256 = _round_up(th_bal, 256)
    th_eff = th_256 if th_256 <= th_fit else th_bal

    # Megacore (v7x has 2 TCs): give the "parallel" row axis >= 2 steps when it is free
    # (weights fully resident -> dedup'd DMA, so the split adds no HBM traffic).
    if n_rows == 1 and n_hidden == 1 and m_sub >= 2 * sublane:
        n_rows = 2
        tm_eff = _round_up(_cdiv(m_sub, 2), sublane)

    m_pad = n_rows * tm_eff
    h_pad = n_hidden * th_eff
    return tm_eff, th_eff, n_rows, n_hidden, m_pad, h_pad


@functools.partial(jax.jit,
                   static_argnames=("tm", "max_th", "use_tanh_gelu", "cast_to_bf16"))
def mlp_pallas(x, w1, b1, w2, b2, tm=512, max_th=2048,
               use_tanh_gelu=False, cast_to_bf16=False):
    """x: (..., d_in) -> (..., d_out). Both matmuls + bias + GELU fused in one kernel."""
    orig_shape = x.shape
    out_dtype = x.dtype
    d_in = orig_shape[-1]
    d_hidden = w1.shape[1]
    d_out = w2.shape[1]

    if cast_to_bf16:
        # Optional accuracy/throughput trade-off: bf16 MXU inputs, f32 accumulation.
        x = x.astype(jnp.bfloat16)
        w1 = w1.astype(jnp.bfloat16)
        w2 = w2.astype(jnp.bfloat16)

    x2d = x.reshape(-1, d_in)
    m = x2d.shape[0]

    x_it = jnp.dtype(x2d.dtype).itemsize
    w_it = jnp.dtype(w1.dtype).itemsize
    o_it = jnp.dtype(out_dtype).itemsize
    b_it = jnp.dtype(b1.dtype).itemsize
    sublane = max(_sublane_multiple(x2d.dtype), _sublane_multiple(out_dtype))

    budget, vmem_cap = _vmem_budget_bytes()
    tm_eff, th_eff, n_rows, n_hidden, m_pad, h_pad = _choose_tiles(
        m, d_in, d_hidden, d_out, x_it, w_it, o_it, b_it,
        sublane, tm, max_th, budget)

    # Host-side zero padding: rows to the balanced row tiles, hidden dim to a multiple
    # of th (zero W1 cols / b1 / zero W2 rows contribute exactly 0 -> numerically exact).
    if m_pad != m:
        x2d = jnp.pad(x2d, ((0, m_pad - m), (0, 0)))
    if h_pad != d_hidden:
        w1 = jnp.pad(w1, ((0, 0), (0, h_pad - d_hidden)))
        b1 = jnp.pad(b1, ((0, h_pad - d_hidden),))
        w2 = jnp.pad(w2, ((0, h_pad - d_hidden), (0, 0)))

    b1_2d = b1.reshape(1, h_pad)
    b2_2d = b2.reshape(1, d_out)

    grid = (n_rows, n_hidden)
    kernel = functools.partial(_mlp_kernel, use_tanh_gelu=use_tanh_gelu)

    # TODO(synk): if profiling shows exposed weight DMA at k-step boundaries, add
    # pipeline_mode=pl.Buffered(3) on the W1/W2 specs only (not x/b2).
    out = pl.pallas_call(
        kernel,
        out_shape=jax.ShapeDtypeStruct((m_pad, d_out), out_dtype),
        grid_spec=pltpu.PrefetchScalarGridSpec(
            num_scalar_prefetch=0,
            grid=grid,
            in_specs=[
                pl.BlockSpec((tm_eff, d_in), lambda i, k: (i, 0)),   # x rows
                pl.BlockSpec((d_in, th_eff), lambda i, k: (0, k)),   # W1 hidden slab
                pl.BlockSpec((1, th_eff), lambda i, k: (0, k)),      # b1 hidden slab
                pl.BlockSpec((th_eff, d_out), lambda i, k: (k, 0)),  # W2 hidden slab
                pl.BlockSpec((1, d_out), lambda i, k: (0, 0)),       # b2
            ],
            out_specs=pl.BlockSpec((tm_eff, d_out), lambda i, k: (i, 0)),
            scratch_shapes=[pltpu.VMEM((tm_eff, d_out), jnp.float32)],
        ),
        compiler_params=pltpu.CompilerParams(
            dimension_semantics=("parallel", "arbitrary"),
            vmem_limit_bytes=int(min(budget, vmem_cap))),
    )(x2d, w1, b1_2d, w2, b2_2d)

    if m_pad != m:
        out = out[:m]
    return out.reshape(*orig_shape[:-1], d_out)


def mlp_reference(x, w1, b1, w2, b2):
    h = jnp.dot(x.astype(jnp.float32), w1.astype(jnp.float32)) + b1.astype(jnp.float32)
    h = 0.5 * h * (1.0 + jax.lax.erf(h * _INV_SQRT2))
    y = jnp.dot(h, w2.astype(jnp.float32)) + b2.astype(jnp.float32)
    return y.astype(x.dtype)


if __name__ == "__main__":
    # Shapes consistent with the module: in_features=32, hidden=4*32=128, out=32.
    batch, seq, d_in = 2, 8, 32
    d_hidden = 4 * d_in
    d_out = d_in

    key = jax.random.PRNGKey(0)
    kx, kw1, kb1, kw2, kb2 = jax.random.split(key, 5)

    x = jax.random.normal(kx, (batch, seq, d_in), dtype=jnp.float32)
    # Params stored as (in, out) = torch weight.T, kaiming-ish scale.
    w1 = jax.random.normal(kw1, (d_in, d_hidden), dtype=jnp.float32) * (1.0 / jnp.sqrt(d_in))
    b1 = jax.random.normal(kb1, (d_hidden,), dtype=jnp.float32) * 0.02
    w2 = jax.random.normal(kw2, (d_hidden, d_out), dtype=jnp.float32) * (1.0 / jnp.sqrt(d_hidden))
    b2 = jax.random.normal(kb2, (d_out,), dtype=jnp.float32) * 0.02

    y = mlp_pallas(x, w1, b1, w2, b2)
    jax.block_until_ready(y)

    y_ref = mlp_reference(x, w1, b1, w2, b2)
    assert y.shape == (batch, seq, d_out)
    assert jnp.allclose(y, y_ref, atol=1e-5, rtol=1e-5), "mismatch vs reference"

    print("KERNEL_OK")
</pallas_src>

<mosaic_0001>
module attributes {stable_mosaic.version = 11 : i64} {
  func.func @_mlp_kernel(%arg0: i32, %arg1: i32, %arg2: memref<8x32xf32, #tpu.memory_space<vmem>>, %arg3: memref<32x128xf32, #tpu.memory_space<vmem>>, %arg4: memref<1x128xf32, #tpu.memory_space<vmem>>, %arg5: memref<128x32xf32, #tpu.memory_space<vmem>>, %arg6: memref<1x32xf32, #tpu.memory_space<vmem>>, %arg7: memref<8x32xf32, #tpu.memory_space<vmem>>, %arg8: memref<8x32xf32, #tpu.memory_space<vmem>>) attributes {dimension_semantics = [#tpu.dimension_semantics<parallel>, #tpu.dimension_semantics<arbitrary>], iteration_bounds = array<i64: 2, 1>, scalar_prefetch = 0 : i64, scratch_operands = 1 : i64, tpu.core_type = #tpu.core_type<tc>, window_params = [{transform_indices = @transform_0, window_bounds = array<i64: 8, 32>}, {transform_indices = @transform_1, window_bounds = array<i64: 32, 128>}, {transform_indices = @transform_2, window_bounds = array<i64: 1, 128>}, {transform_indices = @transform_3, window_bounds = array<i64: 128, 32>}, {pipeline_mode = #tpu.pipeline_mode<synchronous>, transform_indices = @transform_4, window_bounds = array<i64: 1, 32>}, {transform_indices = @transform_5, window_bounds = array<i64: 8, 32>}]} {
    %c0_i32 = arith.constant 0 : i32
    %0 = arith.cmpi eq, %arg1, %c0_i32 : i32
    %1 = arith.extui %0 : i1 to i32
    %c0_i32_0 = arith.constant 0 : i32
    %2 = arith.cmpi ne, %1, %c0_i32_0 : i32
    scf.if %2 {
      %c0_18 = arith.constant 0 : index
      %c0_19 = arith.constant 0 : index
      %25 = vector.load %arg6[%c0_18, %c0_19] : memref<1x32xf32, #tpu.memory_space<vmem>>, vector<1x32xf32>
      %26 = vector.shape_cast %25 : vector<1x32xf32> to vector<1x32xf32>
      %27 = vector.broadcast %26 : vector<1x32xf32> to vector<8x32xf32>
      %c0_20 = arith.constant 0 : index
      %c0_21 = arith.constant 0 : index
      %28 = vector.load %arg8[%c0_20, %c0_21] : memref<8x32xf32, #tpu.memory_space<vmem>>, vector<8x32xf32>
      tpu.vector_store %arg8[%c0_20, %c0_21], %27 {strides = array<i32>} : memref<8x32xf32, #tpu.memory_space<vmem>>, vector<8x32xf32>,
    } else {
    }
    %c0 = arith.constant 0 : index
    %c0_1 = arith.constant 0 : index
    %3 = vector.load %arg2[%c0, %c0_1] : memref<8x32xf32, #tpu.memory_space<vmem>>, vector<8x32xf32>
    %c0_2 = arith.constant 0 : index
    %c0_3 = arith.constant 0 : index
    %4 = vector.load %arg3[%c0_2, %c0_3] : memref<32x128xf32, #tpu.memory_space<vmem>>, vector<32x128xf32>
    %cst = arith.constant dense<0.000000e+00> : vector<8x128xf32>
    %5 = tpu.matmul %3, %4, %cst {dimension_numbers = #tpu.dot_dimension_numbers<[1], [0], [0], [1], [0, 0, 1, 1], [], []>} : vector<8x32xf32>, vector<32x128xf32>, vector<8x128xf32> -> vector<8x128xf32>
    %c0_4 = arith.constant 0 : index
    %c0_5 = arith.constant 0 : index
    %6 = vector.load %arg4[%c0_4, %c0_5] : memref<1x128xf32, #tpu.memory_space<vmem>>, vector<1x128xf32>
    %7 = vector.broadcast %6 : vector<1x128xf32> to vector<8x128xf32>
    %8 = arith.addf %5, %7 : vector<8x128xf32>
    %cst_6 = arith.constant 5.000000e-01 : f32
    %9 = vector.broadcast %cst_6 : f32 to vector<8x128xf32>
    %10 = arith.mulf %9, %8 : vector<8x128xf32>
    %cst_7 = arith.constant 0.707106769 : f32
    %11 = vector.broadcast %cst_7 : f32 to vector<8x128xf32>
    %12 = arith.mulf %8, %11 : vector<8x128xf32>
    %13 = math.erf %12 : vector<8x128xf32>
    %cst_8 = arith.constant 1.000000e+00 : f32
    %14 = vector.broadcast %cst_8 : f32 to vector<8x128xf32>
    %15 = arith.addf %14, %13 : vector<8x128xf32>
    %16 = arith.mulf %10, %15 : vector<8x128xf32>
    %c0_9 = arith.constant 0 : index
    %c0_10 = arith.constant 0 : index
    %17 = vector.load %arg8[%c0_9, %c0_10] : memref<8x32xf32, #tpu.memory_space<vmem>>, vector<8x32xf32>
    %c0_11 = arith.constant 0 : index
    %c0_12 = arith.constant 0 : index
    %18 = vector.load %arg5[%c0_11, %c0_12] : memref<128x32xf32, #tpu.memory_space<vmem>>, vector<128x32xf32>
    %cst_13 = arith.constant dense<0.000000e+00> : vector<8x32xf32>
    %19 = tpu.matmul %16, %18, %cst_13 {dimension_numbers = #tpu.dot_dimension_numbers<[1], [0], [0], [1], [0, 0, 1, 1], [], []>} : vector<8x128xf32>, vector<128x32xf32>, vector<8x32xf32> -> vector<8x32xf32>
    %20 = arith.addf %17, %19 : vector<8x32xf32>
    %c0_14 = arith.constant 0 : index
    %c0_15 = arith.constant 0 : index
    %21 = vector.load %arg8[%c0_14, %c0_15] : memref<8x32xf32, #tpu.memory_space<vmem>>, vector<8x32xf32>
    tpu.vector_store %arg8[%c0_14, %c0_15], %20 {strides = array<i32>} : memref<8x32xf32, #tpu.memory_space<vmem>>, vector<8x32xf32>,
    %c0_i32_16 = arith.constant 0 : i32
    %22 = arith.cmpi eq, %arg1, %c0_i32_16 : i32
    %23 = arith.extui %22 : i1 to i32
    %c0_i32_17 = arith.constant 0 : i32
    %24 = arith.cmpi ne, %23, %c0_i32_17 : i32
    scf.if %24 {
      %c0_18 = arith.constant 0 : index
      %c0_19 = arith.constant 0 : index
      %25 = vector.load %arg8[%c0_18, %c0_19] : memref<8x32xf32, #tpu.memory_space<vmem>>, vector<8x32xf32>
      %c0_20 = arith.constant 0 : index
      %c0_21 = arith.constant 0 : index
      %26 = vector.load %arg7[%c0_20, %c0_21] : memref<8x32xf32, #tpu.memory_space<vmem>>, vector<8x32xf32>
      tpu.vector_store %arg7[%c0_20, %c0_21], %25 {strides = array<i32>} : memref<8x32xf32, #tpu.memory_space<vmem>>, vector<8x32xf32>,
    } else {
    }
    return
  }
  func.func @transform_0(%arg0: i32, %arg1: i32) -> (i32, i32) {
    %c0_i32 = arith.constant 0 : i32
    %c0_i32_0 = arith.constant 0 : i32
    return %arg0, %c0_i32 : i32, i32
  }
  func.func @transform_1(%arg0: i32, %arg1: i32) -> (i32, i32) {
    %c0_i32 = arith.constant 0 : i32
    %c0_i32_0 = arith.constant 0 : i32
    return %c0_i32, %arg1 : i32, i32
  }
  func.func @transform_2(%arg0: i32, %arg1: i32) -> (i32, i32) {
    %c0_i32 = arith.constant 0 : i32
    %c0_i32_0 = arith.constant 0 : i32
    return %c0_i32, %arg1 : i32, i32
  }
  func.func @transform_3(%arg0: i32, %arg1: i32) -> (i32, i32) {
    %c0_i32 = arith.constant 0 : i32
    %c0_i32_0 = arith.constant 0 : i32
    return %arg1, %c0_i32 : i32, i32
  }
  func.func @transform_4(%arg0: i32, %arg1: i32) -> (i32, i32) {
    %c0_i32 = arith.constant 0 : i32
    %c0_i32_0 = arith.constant 0 : i32
    %c0_i32_1 = arith.constant 0 : i32
    return %c0_i32, %c0_i32_0 : i32, i32
  }
  func.func @transform_5(%arg0: i32, %arg1: i32) -> (i32, i32) {
    %c0_i32 = arith.constant 0 : i32
    %c0_i32_0 = arith.constant 0 : i32
    return %arg0, %c0_i32 : i32, i32
  }
}

</mosaic_0001>

<bundles_post_ra>
// kernel: mlp_pallas.1
= control target key start
LH: loop header
LB: loop body
LE: loop exit
PB: predicated region body
PF: predicated region fallthrough
CT: control target
= control target key end

     0   :  { %10 = vsyncpa [#allocation4], 0  ;;  %s1060_s0 = inlined_call_operand.vmem [shape: f32[16,32], index: 0, kind: input, shape index: {}]   ;;  %s1061_s1 = inlined_call_operand.vmem [shape: f32[32,128], index: 1, kind: input, shape index: {}]   ;;  %s1062_s2 = inlined_call_operand.vmem [shape: f32[1,128], index: 2, kind: input, shape index: {}]   ;;  %s1063_s3 = inlined_call_operand.vmem [shape: f32[128,32], index: 3, kind: input, shape index: {}]   ;;  %s1064_s4 = inlined_call_operand.vmem [shape: f32[1,32], index: 4, kind: input, shape index: {}]   ;;  %s1065_s5 = inlined_call_operand.hbm [shape: f32[16,32], index: 5, kind: output, shape index: {}]  }
   0x1   :  { %12 = vsyncpa [#allocation4 + $0x1], 0  ;;  %s861_s18 = smov 0   ;;  %s863_s19 = smov 0  }
   0x2   :  { %s865_s20 = smov 0   ;;  %s867_s21 = smov 0  }
   0x3   :  { %s869_s22 = smov 0   ;;  %s871_s23 = smov 0  }
   0x4 LB: > { %s606_s24 = sadd.s32 4294967295, %s826_s23   ;;  %s607_s25 = sadd.s32 4294967294, %s826_s23   ;;  %s826_s23 = sphi %s871_s23, %s18_s23   ;;  %s822_s22 = sphi %s869_s22, %s1072_s22   ;;  %s818_s21 = sphi %s867_s21, %s1071_s21   ;;  %s814_s20 = sphi %s865_s20, %s1070_s20   ;;  %s810_s19 = sphi %s863_s19, %s1069_s19   ;;  %s806_s18 = sphi %s861_s18, %s1068_s18  }
   0x5   : > { %s30_s26 = sadd.s32 1, %s822_s22  ;;  %s162_s27 = sadd.s32 1, %s814_s20 }
   0x6   : > { %p32_p0 = scmp.ge.s32.totalorder %s30_s26, 2  ;;  %p172_p1 = scmp.ne.s32.totalorder %s814_s20, %s810_s19 }
   0x7   : > { %p173_p2 = scmp.eq.s32.totalorder %s606_s24, 1  ;;  %p178_p3 = scmp.ne.s32.totalorder %s810_s19, %s806_s18 }
   0x8   : > { %s1074_s26 = smov (%p32_p0, %s30_s26), 0  ;;  %p179_p5 = scmp.eq.s32.totalorder %s607_s25, 1 }
   0x9   : > { %p901_p4 = por %p173_p2, %p172_p1  ;;  %s159_s29 = ssub.s32 %s822_s22, %s1074_s26 }
   0xa   : > { %p613_p6 = scmp.ge.s32.totalorder %s826_s23, 1  ;;  %p160_p7 = scmp.eq.s32.totalorder %s159_s29, 0 }
   0xb   : > { %p908_p8 = por %p179_p5, %p178_p3  ;;  %p229_p9 = scmp.lt.s32.totalorder %s826_s23, 3 }
   0xc   : > { %s914_s6 = scalar_select %p160_p7, %s814_s20, %s162_s27  }
   0xd   : > { %p230_p10 = pnand %p613_p6, %p229_p9 }
   0xe   : > { %p268_p11 = scmp.lt.s32.totalorder (!%p230_p10), %s818_s21, 1  ;;  %s265_s11 = sand.u32 (!%p230_p10), 1, %s810_s19  }
   0xf   : > { %233 = sbr.rel (%p230_p10) target bundleno = 460 (0x1cc), region = 40  ;;  %s620_s13 = sshll.u32 (!%p230_p10), %s818_s21, 7 }
  0x10   : > { %s1019_s24 = scalar_lea.hbm (!%p230_p10), %s1065_s5, %s620_s13  ;;  %s484_s25 = scalar_lea.sflag (!%p230_p10), [#allocation4], %s265_s11 }
  0x11   : > { %s830_s29 = smov (!%p230_p10), [#allocation3]  }
  0x12   : > { %s754_s7 = sshll.u32 (!%p230_p10), %s830_s29, 4  ;;  %s755_s7 = int_to_ptr.vmem [resolvable:$false] %s754_s7 }
  0x14   : > { %v302_v0 = vld [vmem:[%s1061_s1 + $0x18] sm:$0xff]  ;;  %v828_v1 = vmov 0.0   ;;  %v301_v2 = vld [vmem:[%s1061_s1 + $0x10] sm:$0xff]  ;;  %vm829_vm0 = vmmov 0   ;;  %v616_v3 = vld [vmem:[%s1064_s4] ss:$0 sm:$0xff] }
  0x15   : > { %645 = vmatprep.subr.mxu0 %v828_v1  ;;  %653 = vmatprep.mubr.msk.f32.mxu0 %vm829_vm0, %v828_v1  ;;  %vm296_vm1 = vcmask 261120   ;;  %v405_v4 = vld [vmem:[%s1063_s3 + $0x78] sm:$0xff]  ;;  %s269_s15 = scalar_select %p268_p11, %s818_s21, 1  ;;  %v404_v5 = vld [vmem:[%s1063_s3 + $0x70] sm:$0xff]  ;;  %v300_v6 = vld [vmem:[%s1061_s1 + $0x8] sm:$0xff] }
  0x16   : > { %646 = vmatpush3.msra.mxu0 %v302_v0  ;;  %297 = vst.msk [vmem:[#allocation2] sm:$0xff] %vm296_vm1, %v616_v3  ;;  %656 = vmatprep.subr.mxu1 %v828_v1  ;;  %v403_v7 = vld [vmem:[%s1063_s3 + $0x68] sm:$0xff]  ;;  %v299_v8 = vld [vmem:[%s1061_s1] sm:$0xff]  ;;  %v401_v11 = vld [vmem:[%s1063_s3 + $0x58] sm:$0xff]  ;;  %s756_s21 = scalar_lea.vmem %s755_s7, 256 }
  0x17   : > { %647 = vmatprep.subr.mxu0 %v828_v1  ;;  %657 = vmatpush3.msra.mxu1 %v405_v4  ;;  %s615_s27 = sshll.u32 %s269_s15, 3  ;;  %v402_v10 = vld [vmem:[%s1063_s3 + $0x60] sm:$0xff]  ;;  %v400_v12 = vld [vmem:[%s1063_s3 + $0x50] sm:$0xff]  ;;  %v399_v13 = vld [vmem:[%s1063_s3 + $0x48] sm:$0xff] }
  0x18   : > { %648 = vmatpush3.msra.mxu0 %v301_v2  ;;  %658 = vmatprep.subr.mxu1 %v828_v1  ;;  %s271_s12 = scalar_lea.vmem %s1060_s0, %s615_s27  ;;  %v398_v14 = vld [vmem:[%s1063_s3 + $0x40] sm:$0xff]  ;;  %v397_v15 = vld [vmem:[%s1063_s3 + $0x38] sm:$0xff]  ;;  %v396_v16 = vld [vmem:[%s1063_s3 + $0x30] sm:$0xff] }
  0x19   : > { %649 = vmatprep.subr.mxu0 %v828_v1  ;;  %659 = vmatpush3.msra.mxu1 %v404_v5  ;;  %v298_v9 = vld [vmem:[%s271_s12] sm:$0xff]  ;;  %v395_v17 = vld [vmem:[%s1063_s3 + $0x28] sm:$0xff]  ;;  %v393_v19 = vld [vmem:[%s1063_s3 + $0x18] sm:$0xff]  ;;  %s614_s12 = sshll.u32 %s265_s11, 3 }
  0x1a   : > { %650 = vmatpush3.msra.mxu0 %v300_v6  ;;  %660 = vmatprep.subr.mxu1 %v828_v1  ;;  %v394_v18 = vld [vmem:[%s1063_s3 + $0x20] sm:$0xff]  ;;  %v392_v20 = vld [vmem:[%s1063_s3 + $0x10] sm:$0xff]  ;;  %v391_v21 = vld [vmem:[%s1063_s3 + $0x8] sm:$0xff]  ;;  %s267_s14 = scalar_lea.vmem [#allocation3], %s614_s12 }
  0x1b   : > { %651 = vmatprep.subr.mxu0 %v828_v1  ;;  %661 = vmatpush3.msra.mxu1 %v403_v7  ;;  %v390_v22 = vld [vmem:[%s1063_s3] sm:$0xff]  ;;  %s497_s15 = sshll.u32 %s267_s14, 4  ;;  %s498_s15 = int_to_ptr.vmem [resolvable:$true] %s497_s15 }
  0x1c   : > { %652 = vmatpush3.msra.mxu0 %v299_v8  ;;  %662 = vmatprep.subr.mxu1 %v828_v1  ;;  %v617_v23 = vld [vmem:[%s1062_s2] ss:$0 sm:$0xff]  ;;  %s750_s27 = scalar_lea.vmem %s498_s15, 128  ;;  %p757_p1 = scmp.lt.s32.totalorder %s498_s15, %s755_s7 }
  0x1d   : > { %654 = vmatmul.mubr.msk.f32.vlgmr.msra.gmra.mxu0 %vm296_vm1, %v298_v9  ;;  %663 = vmatpush3.msra.mxu1 %v402_v10  ;;  %v389_v32 = vld [vmem:[#allocation2] sm:$0xff]  ;;  %p751_p12 = scmp.ne.s32.totalorder %s498_s15, %s750_s27  ;;  %p758_p2 = scmp.lt.s32.totalorder %s756_s21, %s750_s27 }
  0x1e   : > { %664 = vmatprep.subr.mxu1 %v828_v1  ;;  %688 = vmatprep.mubr.msk.f32.mxu1 %vm829_vm0, %v828_v1 }
  0x1f   : > { %665 = vmatpush3.msra.mxu1 %v401_v11  ;;  %p752_p13 = pnand %p751_p12, %p901_p4  ;;  %p759_p3 = por %p758_p2, %p757_p1 }
  0x20   : > { %666 = vmatprep.subr.mxu1 %v828_v1 }
  0x21   : > { %667 = vmatpush3.msra.mxu1 %v400_v12  ;;  %p753_p0 = pneg %p752_p13 }
  0x22   : > { %668 = vmatprep.subr.mxu1 %v828_v1 }
  0x23   : > { %669 = vmatpush3.msra.mxu1 %v399_v13  ;;  %p760_p5 = pnand %p759_p3, %p753_p0 }
  0x24   : > { %670 = vmatprep.subr.mxu1 %v828_v1 }
  0x25   : > { %671 = vmatpush3.msra.mxu1 %v398_v14 }
  0x26   : > { %672 = vmatprep.subr.mxu1 %v828_v1 }
  0x27   : > { %673 = vmatpush3.msra.mxu1 %v397_v15 }
  0x28   : > { %674 = vmatprep.subr.mxu1 %v828_v1 }
  0x29   : > { %675 = vmatpush3.msra.mxu1 %v396_v16 }
  0x2a   : > { %676 = vmatprep.subr.mxu1 %v828_v1 }
  0x2b   : > { %677 = vmatpush3.msra.mxu1 %v395_v17 }
  0x2c   : > { %678 = vmatprep.subr.mxu1 %v828_v1 }
  0x2d   : > { %679 = vmatpush3.msra.mxu1 %v394_v18 }
  0x2e   : > { %680 = vmatprep.subr.mxu1 %v828_v1 }
  0x2f   : > { %681 = vmatpush3.msra.mxu1 %v393_v19 }
  0x30   : > { %682 = vmatprep.subr.mxu1 %v828_v1 }
  0x31   : > { %683 = vmatpush3.msra.mxu1 %v392_v20 }
  0x32   : > { %684 = vmatprep.subr.mxu1 %v828_v1 }
  0x33   : > { %685 = vmatpush3.msra.mxu1 %v391_v21 }
  0x34   : > { %686 = vmatprep.subr.mxu1 %v828_v1 }
  0x35   : > { %687 = vmatpush3.msra.mxu1 %v390_v22 }
  0xdd   : > { %v380_v24 = vpop.f32.mrf.mxu0 }
  0xde   : > { %v381_v25 = vadd.f32 %v617_v23, %v380_v24 }
  0xdf   : > { %v655_v26 = vpop.f32.mrf.mxu0 }
  0xe0   : > { %v385_v27 = vmul.f32 0.70710677, %v381_v25  ;;  %v384_v29 = vmul.f32 0.5, %v381_v25 }
  0xe2   : > { %748 = verf.f32 %v385_v27 }
  0xef   : > { %v749_v28 = vpop.eup %748 }
  0xf0   : > { %v387_v30 = vadd.f32 1.0, %v749_v28 }
  0xf2   : > { %v388_v31 = vmul.f32 %v387_v30, %v384_v29 }
  0xf4   : > { %689 = vmatmul.mubr.f32.vlgmr.msra.gmra.mxu1 %v388_v31 }
 0x1b4   : > { %v472_v33 = vpop.f32.mrf.mxu1 }
 0x1b5   : > { %v476_v34 = vadd.f32 %v472_v33, %v389_v32 }
 0x1b6   : > { %v690_v35 = vpop.f32.mrf.mxu1 }
 0x1b7   : > { %477 = vst.msk [vmem:[#allocation2] sm:$0xff] %vm296_vm1, %v476_v34 }
 0x1be   : > { %v481_v36 = vld [vmem:[#allocation2] sm:$0xff] }
 0x1bf   : > { %482 = vst.msk [vmem:[%s267_s14] sm:$0xff] %vm296_vm1, %v481_v36 }
 0x1c0   : > { %763 = shalt.err (!%p760_p5)
}
 0x1c1   : > { %s764_s8 = scalar_lea.hbm %s1019_s24, 128  ;;  %s768_s11 = scalar_lea.hbm %s1065_s5, 256 }
 0x1c2   : > { %p765_p6 = scmp.ne.s32.totalorder %s1019_s24, %s764_s8  ;;  %p769_p10 = scmp.lt.s32.totalorder %s1019_s24, %s1065_s5 }
 0x1c3   : > { %p770_p11 = scmp.lt.s32.totalorder %s768_s11, %s764_s8 }
 0x1c4   : > { %p766_p7 = pnand %p765_p6, %p901_p4 }
 0x1c5   : > { %p771_p12 = por %p770_p11, %p769_p10 }
 0x1c6   : > { %p767_p9 = pneg %p766_p7 }
 0x1c8   : > { %p772_p13 = pnand %p771_p12, %p767_p9 }
 0x1ca   : > { %775 = shalt.err (!%p772_p13)
}
 0x1cb   : > { %691 = dma.vmem_to_hbm [thread:$0]  (%p901_p4), %s498_s15, 128, %s1019_s24, %s484_s25  }
 0x1cc PF: > { %p697_p0 = scmp.ge.s32.totalorder %s826_s23, 2  ;;  %s509_s14 = sand.u32 1, %s806_s18  }
 0x1cd   : > { %s510_s16 = scalar_lea.sflag [#allocation4], %s509_s14 }
 0x1ce   : > { %p694_p1 = pnand %p697_p0, %p908_p8 }
 0x1d0   : > { %p695_p2 = pneg %p694_p1 }
 0x1d2   : > { %801 = dma.done.wait (%p695_p2), %s510_s16, 128  }
 0x1d3   : > { %803 = vsyncadd (%p695_p2), %s510_s16, 4294967168  ;;  %s18_s23 = sadd.s32 1, %s826_s23   ;;  %s1068_s18 = smov %s810_s19 }
 0x1d4   : > { %p15_p3 = scmp.ge.s32.totalorder %s18_s23, 4   ;;  %s1069_s19 = smov %s814_s20 }
 0x1d5   : > { %s1070_s20 = smov %s914_s6  ;;  %s1071_s21 = smov %s822_s22 }
 0x1d6   : > { %s1072_s22 = smov %s1074_s26  ;;  %17 = sbr.rel (!%p15_p3) target bundleno = 4 (0x4), region = 92 }
 0x1db   :  { %515 = vsyncpa [#allocation4], 1 }
 0x1dc   :  { %517 = vsyncpa [#allocation4 + $0x1], 1 }

</bundles_post_ra>
